<compile_context>
chip_gen: v6e
topology: v6e:2x2x1
jax: 0.10.0
libtpu: 0.0.40
codegen_flags: <defaults>
</compile_context>

<pallas_src>
import functools

import jax
import jax.numpy as jnp
from jax import lax
from jax.experimental import pallas as pl
from jax.experimental.pallas import tpu as pltpu

_LANE = 128
_SUBLANE = 8


def _round_up(x, m):
    return ((x + m - 1) // m) * m


def _cdiv(a, b):
    return (a + b - 1) // b


def _bce_partial_kernel(x_ref, y_ref, partial_ref, *, tm, tn, total, mask_mode):
    """One (tm, tn) row-block: BCE-with-logits folded down to (8, tn)."""
    x = x_ref[...].astype(jnp.float32)
    y = y_ref[...].astype(jnp.float32)
    # Numerically-stable BCE with logits (matches torch.nn.BCEWithLogitsLoss):
    #   max(x, 0) - x*y + log1p(exp(-|x|))
    per = jnp.maximum(x, 0.0) - x * y + jnp.log1p(jnp.exp(-jnp.abs(x)))
    # TODO(synk): if xprof shows the EUP slot binding on v6e/v7x, evaluate
    # exp(-|x|) in bf16 while keeping log1p/accumulation in f32.

    def fold(v):
        # (tm, tn) -> (8, tn): whole sublane-group adds, pure VPU (no XLU).
        return v.reshape(tm // _SUBLANE, _SUBLANE, tn).sum(axis=0)

    def masked(v):
        # Zero elements whose flat index >= total.  x=y=0 padding is NOT
        # neutral (gives log(2)) and ragged OOB reads may be garbage/NaN, so
        # this must stay a select (jnp.where), never a multiply-by-mask.
        i = pl.program_id(0)
        grow = i * tm + lax.broadcasted_iota(jnp.int32, (tm, 1), 0)
        col = lax.broadcasted_iota(jnp.int32, (1, tn), 1)
        valid = (grow < (total // tn)) | (
            (grow == (total // tn)) & (col < (total % tn)))
        return jnp.where(valid, v, 0.0)

    if mask_mode == "none":
        partial_ref[...] = fold(per)
    elif mask_mode == "always":
        partial_ref[...] = fold(masked(per))
    else:  # "last_only": unmasked fast path for every block but the last.
        is_last = pl.program_id(0) == pl.num_programs(0) - 1

        @pl.when(jnp.logical_not(is_last))
        def _():
            partial_ref[...] = fold(per)

        @pl.when(is_last)
        def _():
            partial_ref[...] = fold(masked(per))


def _pick_tn(total):
    """Largest multiple of 128 (<= 2048) dividing total; else fallback width."""
    cap = min(2048, (total // _LANE) * _LANE)
    for cand in range(cap, 0, -_LANE):
        if total % cand == 0:
            return cand, True
    return min(2048, _round_up(min(total, 2048), _LANE)), False


def segmentation_loss(pred_seg_logits, target_segs, *,
                      loss_type="bce_with_logits",
                      target_block_bytes=4 << 20):
    """SegmentationLoss(loss_type='bce_with_logits').forward in Pallas."""
    if loss_type != "bce_with_logits":
        # TODO(synk): 'dice' loss branch not implemented as a kernel.
        raise NotImplementedError("only loss_type='bce_with_logits' is implemented")
    if isinstance(pred_seg_logits, (list, tuple)):
        pred_seg_logits = jnp.concatenate(pred_seg_logits, axis=0)
        target_segs = jnp.concatenate(target_segs, axis=0)
    # TODO(synk): bilinear-resize branch (target H != pred H) not implemented.
    assert pred_seg_logits.shape == target_segs.shape, (
        "resize branch not implemented; shapes must match")

    total = int(pred_seg_logits.size)
    itemsizes = (jnp.dtype(pred_seg_logits.dtype).itemsize,
                 jnp.dtype(target_segs.dtype).itemsize)
    dtype_bytes = max(itemsizes)
    # Narrow dtypes need taller min tiles: 8 (32-bit) / 16 (16-bit) / 32 (8-bit).
    min_sub = max(_SUBLANE, *(32 // ib for ib in itemsizes))

    # ---- Column width: copy-free reshape when a lane-multiple divisor exists.
    tn, _divisible = _pick_tn(total)
    rows = _cdiv(total, tn)

    # ---- Row block: ~target_block_bytes per input block, multiple of min_sub.
    tm = (target_block_bytes // (tn * dtype_bytes)) // min_sub * min_sub
    tm = max(min_sub, min(tm, 1024, _round_up(rows, min_sub)))
    num_blocks = _cdiv(rows, tm)          # ragged last block; no block padding

    # ---- Flatten; pad only in the (rare) non-divisible fallback (< tn elems).
    x_flat = pred_seg_logits.reshape(-1)
    y_flat = target_segs.reshape(-1)
    pad = rows * tn - total
    if pad:
        x_flat = jnp.pad(x_flat, (0, pad))
        y_flat = jnp.pad(y_flat, (0, pad))
    x2d = x_flat.reshape(rows, tn)
    y2d = y_flat.reshape(rows, tn)

    if pad == 0 and rows % tm == 0:
        mask_mode = "none"          # every block is full; zero mask overhead
    elif num_blocks == 1:
        mask_mode = "always"
    else:
        mask_mode = "last_only"

    kernel = functools.partial(_bce_partial_kernel, tm=tm, tn=tn, total=total,
                               mask_mode=mask_mode)

    cost = pl.CostEstimate(
        flops=6 * total,
        transcendentals=2 * total,
        bytes_accessed=int(x2d.nbytes) + int(y2d.nbytes)
        + num_blocks * _SUBLANE * tn * 4,
    )

    partials = pl.pallas_call(
        kernel,
        out_shape=jax.ShapeDtypeStruct((num_blocks * _SUBLANE, tn), jnp.float32),
        grid_spec=pltpu.PrefetchScalarGridSpec(
            num_scalar_prefetch=0,
            grid=(num_blocks,),
            in_specs=[
                pl.BlockSpec((tm, tn), lambda i: (i, 0)),
                pl.BlockSpec((tm, tn), lambda i: (i, 0)),
            ],
            out_specs=pl.BlockSpec((_SUBLANE, tn), lambda i: (i, 0)),
        ),
        compiler_params=pltpu.CompilerParams(
            dimension_semantics=("parallel",),
            vmem_limit_bytes=48 * 1024 * 1024,
            # Only relevant in the fallback: let XLA fuse the tiny pad/reshape
            # into the pallas_call instead of a separate HBM pass.
            allow_input_fusion=[True, True] if pad else None,
        ),
        cost_estimate=cost,
    )(x2d, y2d)

    # Tiny final cross-lane reduce + mean in f32, outside the kernel.
    return jnp.sum(partials) / jnp.float32(total)


def _reference_bce(pred, target):
    x = pred.astype(jnp.float32)
    y = target.astype(jnp.float32)
    per = jnp.maximum(x, 0.0) - x * y + jnp.log1p(jnp.exp(-jnp.abs(x)))
    return jnp.mean(per)


if __name__ == "__main__":
    key = jax.random.PRNGKey(0)
    k1, k2 = jax.random.split(key)
    B, C, H, W = 2, 4, 16, 16
    pred_seg_logits = jax.random.normal(k1, (B, C, H, W), dtype=jnp.float32)
    # Binary targets in {0, 1} (any dtype works; kept f32 to mirror torch).
    target_segs = (jax.random.uniform(k2, (B, C, H, W)) > 0.5).astype(jnp.float32)

    loss = segmentation_loss(pred_seg_logits, target_segs)
    loss = jax.block_until_ready(loss)

    ref = _reference_bce(pred_seg_logits, target_segs)
    assert jnp.allclose(loss, ref, rtol=1e-5, atol=1e-5), (loss, ref)

    print("KERNEL_OK")
</pallas_src>

<mosaic_0001>
module attributes {stable_mosaic.version = 11 : i64} {
  func.func @_bce_partial_kernel(%arg0: i32, %arg1: memref<8x2048xf32, #tpu.memory_space<vmem>>, %arg2: memref<8x2048xf32, #tpu.memory_space<vmem>>, %arg3: memref<8x2048xf32, #tpu.memory_space<vmem>>) attributes {dimension_semantics = [#tpu.dimension_semantics<parallel>], iteration_bounds = array<i64: 1>, scalar_prefetch = 0 : i64, scratch_operands = 0 : i64, tpu.core_type = #tpu.core_type<tc>, window_params = [{transform_indices = @transform_0, window_bounds = array<i64: 8, 2048>}, {transform_indices = @transform_1, window_bounds = array<i64: 8, 2048>}, {transform_indices = @transform_2, window_bounds = array<i64: 8, 2048>}]} {
    %c0 = arith.constant 0 : index
    %c0_0 = arith.constant 0 : index
    %0 = vector.load %arg1[%c0, %c0_0] : memref<8x2048xf32, #tpu.memory_space<vmem>>, vector<8x2048xf32>
    %c0_1 = arith.constant 0 : index
    %c0_2 = arith.constant 0 : index
    %1 = vector.load %arg2[%c0_1, %c0_2] : memref<8x2048xf32, #tpu.memory_space<vmem>>, vector<8x2048xf32>
    %cst = arith.constant 0.000000e+00 : f32
    %2 = vector.broadcast %cst : f32 to vector<8x2048xf32>
    %3 = arith.maximumf %0, %2 : vector<8x2048xf32>
    %4 = arith.mulf %0, %1 : vector<8x2048xf32>
    %5 = arith.subf %3, %4 : vector<8x2048xf32>
    %6 = math.absf %0 : vector<8x2048xf32>
    %cst_3 = arith.constant 0.000000e+00 : f32
    %7 = vector.broadcast %cst_3 : f32 to vector<8x2048xf32>
    %8 = arith.subf %7, %6 : vector<8x2048xf32>
    %9 = math.exp %8 : vector<8x2048xf32>
    %10 = math.log1p %9 : vector<8x2048xf32>
    %11 = arith.addf %5, %10 : vector<8x2048xf32>
    %c8_i32 = arith.constant 8 : i32
    %12 = arith.muli %arg0, %c8_i32 : i32
    %13 = tpu.iota {dimensions = array<i32: 0>} : vector<8x1xi32>
    %14 = vector.broadcast %12 : i32 to vector<8x1xi32>
    %15 = arith.addi %14, %13 : vector<8x1xi32>
    %16 = tpu.iota {dimensions = array<i32: 1>} : vector<1x2048xi32>
    %c1_i32 = arith.constant 1 : i32
    %17 = vector.broadcast %c1_i32 : i32 to vector<8x1xi32>
    %18 = arith.cmpi slt, %15, %17 : vector<8x1xi32>
    %c1_i32_4 = arith.constant 1 : i32
    %19 = vector.broadcast %c1_i32_4 : i32 to vector<8x1xi32>
    %20 = arith.cmpi eq, %15, %19 : vector<8x1xi32>
    %c0_i32 = arith.constant 0 : i32
    %21 = vector.broadcast %c0_i32 : i32 to vector<1x2048xi32>
    %22 = arith.cmpi slt, %16, %21 : vector<1x2048xi32>
    %23 = vector.broadcast %20 : vector<8x1xi1> to vector<8x2048xi1>
    %24 = vector.broadcast %22 : vector<1x2048xi1> to vector<8x2048xi1>
    %25 = arith.andi %23, %24 : vector<8x2048xi1>
    %26 = vector.broadcast %18 : vector<8x1xi1> to vector<8x2048xi1>
    %27 = arith.ori %26, %25 : vector<8x2048xi1>
    %cst_5 = arith.constant 0.000000e+00 : f32
    %28 = vector.broadcast %cst_5 : f32 to vector<8x2048xf32>
    %29 = arith.select %27, %11, %28 : vector<8x2048xi1>, vector<8x2048xf32>
    %30 = vector.shape_cast %29 : vector<8x2048xf32> to vector<1x8x2048xf32>
    %cst_6 = arith.constant dense<0.000000e+00> : vector<8x2048xf32>
    %31 = vector.multi_reduction <add>, %30, %cst_6 [0] : vector<1x8x2048xf32> to vector<8x2048xf32>
    %c0_7 = arith.constant 0 : index
    %c0_8 = arith.constant 0 : index
    %32 = vector.load %arg3[%c0_7, %c0_8] : memref<8x2048xf32, #tpu.memory_space<vmem>>, vector<8x2048xf32>
    tpu.vector_store %arg3[%c0_7, %c0_8], %31 {strides = array<i32>} : memref<8x2048xf32, #tpu.memory_space<vmem>>, vector<8x2048xf32>,
    return
  }
  func.func @transform_0(%arg0: i32) -> (i32, i32) {
    %c0_i32 = arith.constant 0 : i32
    %c0_i32_0 = arith.constant 0 : i32
    return %arg0, %c0_i32 : i32, i32
  }
  func.func @transform_1(%arg0: i32) -> (i32, i32) {
    %c0_i32 = arith.constant 0 : i32
    %c0_i32_0 = arith.constant 0 : i32
    return %arg0, %c0_i32 : i32, i32
  }
  func.func @transform_2(%arg0: i32) -> (i32, i32) {
    %c0_i32 = arith.constant 0 : i32
    %c0_i32_0 = arith.constant 0 : i32
    return %arg0, %c0_i32 : i32, i32
  }
}

</mosaic_0001>

<bundles_post_ra>
// kernel: tpu_custom_call.1
= control target key start
LH: loop header
LB: loop body
LE: loop exit
PB: predicated region body
PF: predicated region fallthrough
CT: control target
= control target key end

     0   :  { %7 = vsyncpa [#allocation3], 0  ;;  %s1363_s0 = inlined_call_operand.hbm [shape: f32[1,2048], index: 0, kind: input, shape index: {}]   ;;  %s1364_s1 = inlined_call_operand.hbm [shape: f32[1,2048], index: 1, kind: input, shape index: {}]   ;;  %s1365_s2 = inlined_call_operand.hbm [shape: f32[8,2048], index: 2, kind: output, shape index: {}]  }
   0x1   :  { %8 = vsyncpa [#allocation6], 0 }
   0x2   :  { %9 = vsyncpa [#allocation4], 0 }
   0x3   :  { %14 = vsyncadd [#allocation3], 1792  ;;  %s956_s9 = smov [#allocation2]  }
   0x4   :  { %s15_s10 = sshll.u32 %s956_s9, 4  ;;  %s16_s10 = int_to_ptr.vmem [resolvable:$true] %s15_s10 }
   0x5   :  { %s898_s11 = scalar_lea.vmem %s16_s10, 256  ;;  %s902_s12 = scalar_lea.vmem %s16_s10, 2048 }
   0x6   :  { %p899_p0 = scmp.ne.s32.totalorder %s16_s10, %s898_s11  ;;  %p903_p1 = scmp.lt.s32.totalorder %s16_s10, %s16_s10 }
   0x7   :  { %p904_p2 = scmp.lt.s32.totalorder %s902_s12, %s898_s11 }
   0x9   :  { %p905_p3 = por %p904_p2, %p903_p1 }
   0xb   :  { %p906_p4 = pnand %p905_p3, %p899_p0 }
   0xd   :  { %909 = shalt.err (!%p906_p4)
}
   0xe   :  { %s957_s13 = smov 256   ;;  %s958_s14 = smov 16  }
   0xf   :  { %21 = dma.hbm_to_vmem [thread:$0]  %s1363_s0, 256, %s16_s10, [#allocation3], %s957_s13, %s957_s13, %s958_s14  }
  0x10   :  { %26 = vsyncadd [#allocation6], 1792  ;;  %s959_s17 = smov [#allocation5]  }
  0x11   :  { %s27_s18 = sshll.u32 %s959_s17, 4  ;;  %s28_s18 = int_to_ptr.vmem [resolvable:$true] %s27_s18 }
  0x12   :  { %s918_s19 = scalar_lea.vmem %s28_s18, 256  ;;  %s922_s20 = scalar_lea.vmem %s28_s18, 2048 }
  0x13   :  { %p919_p5 = scmp.ne.s32.totalorder %s28_s18, %s918_s19  ;;  %p923_p6 = scmp.lt.s32.totalorder %s28_s18, %s28_s18 }
  0x14   :  { %p924_p7 = scmp.lt.s32.totalorder %s922_s20, %s918_s19 }
  0x16   :  { %p925_p8 = por %p924_p7, %p923_p6 }
  0x18   :  { %p926_p9 = pnand %p925_p8, %p919_p5 }
  0x1a   :  { %929 = shalt.err (!%p926_p9)
}
  0x1b   :  { %33 = dma.hbm_to_vmem [thread:$0]  %s1364_s1, 256, %s28_s18, [#allocation6], %s957_s13, %s957_s13, %s958_s14  }
  0x1c   :  { %950 = dma.done.wait [#allocation3], 2048  }
  0x1d   :  { %951 = vsyncadd [#allocation3], 4294965248 }
  0x1e   :  { %952 = dma.done.wait [#allocation6], 2048  }
  0x1f   :  { %953 = vsyncadd [#allocation6], 4294965248  ;;  %v983_v0 = vld [vmem:[#allocation2] sm:$0xff]  ;;  %v985_v1 = vld [vmem:[#allocation2 + $0x10] sm:$0xff]  ;;  %v345_v27 = vlaneseq  ;;  %v960_v28 = vmov 1966171168  }
  0x20   :  { %v987_v2 = vld [vmem:[#allocation2 + $0x20] sm:$0xff]  ;;  %v989_v3 = vld [vmem:[#allocation2 + $0x30] sm:$0xff]  ;;  %v120_v7 = vand.u32 2147483647, %v983_v0  ;;  %v122_v9 = vand.u32 2147483647, %v985_v1  ;;  %v477_v29 = vunpack.c.l.s4 %v960_v28 }
  0x21   :  { %v991_v4 = vld [vmem:[#allocation2 + $0x40] sm:$0xff]  ;;  %v993_v5 = vld [vmem:[#allocation2 + $0x50] sm:$0xff]  ;;  %v124_v10 = vand.u32 2147483647, %v987_v2  ;;  %v126_v11 = vand.u32 2147483647, %v989_v3 }
  0x22   :  { %v995_v6 = vld [vmem:[#allocation2 + $0x60] sm:$0xff]  ;;  %v998_v8 = vld [vmem:[#allocation2 + $0x70] sm:$0xff]  ;;  %v128_v12 = vand.u32 2147483647, %v991_v4  ;;  %v130_v13 = vand.u32 2147483647, %v993_v5  ;;  %v478_v39 = vunpack.c.0.s8 %v477_v29 }
  0x23   :  { %v132_v14 = vand.u32 2147483647, %v995_v6  ;;  %v136_v15 = vsub.f32 0.0, %v120_v7  ;;  %v138_v16 = vsub.f32 0.0, %v122_v9  ;;  %v140_v17 = vsub.f32 0.0, %v124_v10  ;;  %v56_v32 = vld [vmem:[#allocation5] sm:$0xff] }
  0x24   :  { %v142_v18 = vsub.f32 0.0, %v126_v11  ;;  %v134_v19 = vand.u32 2147483647, %v998_v8  ;;  %v144_v20 = vsub.f32 0.0, %v128_v12  ;;  %v146_v21 = vsub.f32 0.0, %v130_v13  ;;  %v58_v34 = vld [vmem:[#allocation5 + $0x10] sm:$0xff] }
  0x25   :  { %v152_v22 = vmul.f32 1.442695, %v136_v15  ;;  %v156_v23 = vmul.f32 1.442695, %v138_v16  ;;  %v160_v24 = vmul.f32 1.442695, %v140_v17  ;;  %v88_v49 = vmul.f32 %v56_v32, %v983_v0 }
  0x26   :  { %v148_v25 = vsub.f32 0.0, %v132_v14  ;;  %v164_v26 = vmul.f32 1.442695, %v142_v18  ;;  %v168_v30 = vmul.f32 1.442695, %v144_v20  ;;  %v150_v31 = vsub.f32 0.0, %v134_v19 }
  0x27   :  { %826 = vpow2.f32 %v152_v22  ;;  %v172_v33 = vmul.f32 1.442695, %v146_v21  ;;  %v60_v35 = vld [vmem:[#allocation5 + $0x20] sm:$0xff]  ;;  %v62_v36 = vld [vmem:[#allocation5 + $0x30] sm:$0xff]  ;;  %v1007_v38 = vshrl.u32 %v345_v27, 7  ;;  %v72_v42 = vmax.f32 %v983_v0, 0.0 }
  0x28   :  { %828 = vpow2.f32 %v156_v23  ;;  %v176_v37 = vmul.f32 1.442695, %v148_v25  ;;  %v64_v40 = vld [vmem:[#allocation5 + $0x40] sm:$0xff]  ;;  %v66_v41 = vld [vmem:[#allocation5 + $0x50] sm:$0xff]  ;;  %v74_v43 = vmax.f32 %v985_v1, 0.0  ;;  %v76_v44 = vmax.f32 %v987_v2, 0.0 }
  0x29   :  { %830 = vpow2.f32 %v160_v24  ;;  %v68_v45 = vld [vmem:[#allocation5 + $0x60] sm:$0xff]  ;;  %v70_v46 = vld [vmem:[#allocation5 + $0x70] sm:$0xff]  ;;  %v78_v47 = vmax.f32 %v989_v3, 0.0  ;;  %v80_v48 = vmax.f32 %v991_v4, 0.0  ;;  %v180_v50 = vmul.f32 1.442695, %v150_v31 }
  0x2a   :  { %832 = vpow2.f32 %v164_v26  ;;  %v90_v51 = vmul.f32 %v58_v34, %v985_v1  ;;  %v92_v52 = vmul.f32 %v60_v35, %v987_v2  ;;  %v94_v53 = vmul.f32 %v62_v36, %v989_v3  ;;  %v1018_v54 = vld [vmem:[#allocation2 + $0x8] sm:$0xff]  ;;  %v1027_v62 = vld [vmem:[#allocation2 + $0x18] sm:$0xff]  ;;  %s961_s0 = smov [#allocation7]  }
  0x2b   :  { %834 = vpow2.f32 %v168_v30  ;;  %v82_v55 = vmax.f32 %v993_v5, 0.0  ;;  %v96_v56 = vmul.f32 %v64_v40, %v991_v4  ;;  %v98_v57 = vmul.f32 %v66_v41, %v993_v5  ;;  %v1029_v63 = vld [vmem:[#allocation2 + $0x28] sm:$0xff]  ;;  %v1034_v1 = vld [vmem:[#allocation2 + $0x38] sm:$0xff]  ;;  %s810_s1 = sshll.u32 %s961_s0, 4  ;;  %s811_s1 = int_to_ptr.vmem [resolvable:$true] %s810_s1 }
  0x2c   :  { %836 = vpow2.f32 %v172_v33  ;;  %v84_v58 = vmax.f32 %v995_v6, 0.0  ;;  %v86_v59 = vmax.f32 %v998_v8, 0.0  ;;  %v100_v60 = vmul.f32 %v68_v45, %v995_v6  ;;  %v1036_v2 = vld [vmem:[#allocation2 + $0x48] sm:$0xff]  ;;  %v1047_v9 = vld [vmem:[#allocation2 + $0x58] sm:$0xff]  ;;  %s930_s23 = scalar_lea.vmem %s811_s1, 2048  ;;  %p935_p11 = scmp.lt.s32.totalorder %s811_s1, %s811_s1 }
  0x2d   :  { %838 = vpow2.f32 %v176_v37  ;;  %v102_v61 = vmul.f32 %v70_v46, %v998_v8  ;;  %v1032_v0 = vsub.s32 %v478_v39, %v1007_v38  ;;  %v57_v3 = vld [vmem:[#allocation5 + $0x8] sm:$0xff]  ;;  %v121_v4 = vand.u32 2147483647, %v1018_v54  ;;  %v59_v11 = vld [vmem:[#allocation5 + $0x18] sm:$0xff]  ;;  %p931_p10 = scmp.ne.s32.totalorder %s811_s1, %s930_s23  ;;  %p936_p12 = scmp.lt.s32.totalorder %s930_s23, %s930_s23 }
  0x2e   :  { %840 = vpow2.f32 %v180_v50  ;;  %v1039_v5 = vsub.f32 %v72_v42, %v88_v49  ;;  %v1041_v6 = vsub.f32 %v74_v43, %v90_v51  ;;  %v1043_v7 = vsub.f32 %v76_v44, %v92_v52  ;;  %v1049_v10 = vld [vmem:[#allocation2 + $0x68] sm:$0xff]  ;;  %v1055_v14 = vld [vmem:[#allocation2 + $0x78] sm:$0xff] }
  0x2f   :  { %v1045_v8 = vsub.f32 %v78_v47, %v94_v53  ;;  %v1051_v12 = vsub.f32 %v80_v48, %v96_v56  ;;  %v1053_v13 = vsub.f32 %v82_v55, %v98_v57  ;;  %v61_v15 = vld [vmem:[#allocation5 + $0x28] sm:$0xff]  ;;  %v123_v16 = vand.u32 2147483647, %v1027_v62  ;;  %p937_p13 = por %p936_p12, %p935_p11 }
  0x30   :  { %v125_v17 = vand.u32 2147483647, %v1029_v63  ;;  %v1059_v18 = vsub.f32 %v84_v58, %v100_v60  ;;  %v1061_v19 = vsub.f32 %v86_v59, %v102_v61  ;;  %v1064_v20 = vmul.f32 %v57_v3, %v1018_v54 }
  0x31   :  { %v127_v21 = vand.u32 2147483647, %v1034_v1  ;;  %v1070_v23 = vmul.f32 %v59_v11, %v1027_v62  ;;  %v129_v24 = vand.u32 2147483647, %v1036_v2  ;;  %v131_v25 = vand.u32 2147483647, %v1047_v9  ;;  %p938_p0 = pnand %p937_p13, %p931_p10 }
  0x32   :  { %v137_v26 = vsub.f32 0.0, %v121_v4  ;;  %v1076_v29 = vmul.f32 %v61_v15, %v1029_v63  ;;  %v133_v30 = vand.u32 2147483647, %v1049_v10  ;;  %v135_v31 = vand.u32 2147483647, %v1055_v14 }
  0x33   :  { %v73_v34 = vmax.f32 %v1018_v54, 0.0  ;;  %v139_v35 = vsub.f32 0.0, %v123_v16  ;;  %v141_v36 = vsub.f32 0.0, %v125_v17  ;;  %v75_v40 = vmax.f32 %v1027_v62, 0.0 }
  0x34   :  { %v1067_v22 = vpop.eup %826  ;;  %v143_v41 = vsub.f32 0.0, %v127_v21  ;;  %v145_v43 = vsub.f32 0.0, %v129_v24  ;;  %v1087_v44 = vsub.f32 0.0, %v131_v25  ;;  %v154_v45 = vmul.f32 1.442695, %v137_v26 }
  0x35   :  { %v829_v27 = vpop.eup %828  ;;  %v184_v28 = vadd.f32 1.0, %v1067_v22  ;;  %v1090_v47 = vsub.f32 0.0, %v133_v30  ;;  %v1092_v48 = vsub.f32 0.0, %v135_v31  ;;  %v187_v50 = vmul.f32 -0.5, %v1067_v22 }
  0x36   :  { %v1080_v32 = vpop.eup %830  ;;  %v202_v33 = vadd.f32 1.0, %v829_v27  ;;  %v205_v51 = vmul.f32 -0.5, %v829_v27  ;;  %v158_v52 = vmul.f32 1.442695, %v139_v35  ;;  %v162_v53 = vmul.f32 1.442695, %v141_v36 }
  0x37   :  { %v1083_v37 = vpop.eup %832  ;;  %842 = vlog2.f32 %v184_v28  ;;  %v220_v39 = vadd.f32 1.0, %v1080_v32  ;;  %v190_v56 = vand.u32 2147483647, %v1067_v22  ;;  %v166_v58 = vmul.f32 1.442695, %v143_v41 }
  0x38   :  { %v835_v42 = vpop.eup %834  ;;  %844 = vlog2.f32 %v202_v33  ;;  %v238_v46 = vadd.f32 1.0, %v1083_v37  ;;  %v208_v59 = vand.u32 2147483647, %v829_v27  ;;  %v223_v60 = vmul.f32 -0.5, %v1080_v32 }
  0x39   :  { %846 = vlog2.f32 %v220_v39  ;;  %v837_v49 = vpop.eup %836  ;;  %v256_v57 = vadd.f32 1.0, %v835_v42  ;;  %v1099_v61 = vmul.f32 1.442695, %v145_v43  ;;  %v241_v4 = vmul.f32 -0.5, %v1083_v37 }
  0x3a   :  { %v1095_v55 = vpop.eup %838  ;;  %848 = vlog2.f32 %v238_v46  ;;  %v259_v11 = vmul.f32 -0.5, %v835_v42  ;;  %v274_v15 = vadd.f32 1.0, %v837_v49  ;;  %v188_v16 = vadd.f32 1.0, %v187_v50 }
  0x3b   :  { %850 = vpow2.f32 %v154_v45  ;;  %v1101_v3 = vpop.eup %840  ;;  %v206_v17 = vadd.f32 1.0, %v205_v51  ;;  %v292_v21 = vadd.f32 1.0, %v1095_v55  ;;  %vm1105_vm0 = vcmp.lt.f32.partialorder %v190_v56, 0.0004427343 }
  0x3c   :  { %852 = vlog2.f32 %v256_v57  ;;  %v226_v25 = vand.u32 2147483647, %v1080_v32  ;;  %v277_v26 = vmul.f32 -0.5, %v837_v49  ;;  %v224_v28 = vadd.f32 1.0, %v223_v60 }
  0x3d   :  { %854 = vpow2.f32 %v158_v52  ;;  %v244_v30 = vand.u32 2147483647, %v1083_v37  ;;  %v310_v31 = vadd.f32 1.0, %v1101_v3  ;;  %vm1112_vm1 = vcmp.lt.f32.partialorder %v208_v59, 0.0004427343 }
  0x3e   :  { %856 = vlog2.f32 %v274_v15  ;;  %v242_v35 = vadd.f32 1.0, %v241_v4  ;;  %v260_v36 = vadd.f32 1.0, %v259_v11  ;;  %v262_v39 = vand.u32 2147483647, %v835_v42 }
  0x3f   :  { %858 = vlog2.f32 %v292_v21  ;;  %v189_v41 = vmul.f32 %v1067_v22, %v188_v16  ;;  %v207_v43 = vmul.f32 %v829_v27, %v206_v17  ;;  %v295_v45 = vmul.f32 -0.5, %v1095_v55 }
  0x40   :  { %860 = vlog2.f32 %v310_v31  ;;  %vm1118_vm2 = vcmp.lt.f32.partialorder %v226_v25, 0.0004427343  ;;  %v278_v50 = vadd.f32 1.0, %v277_v26  ;;  %v280_v51 = vand.u32 2147483647, %v837_v49 }
  0x41   :  { %862 = vpow2.f32 %v162_v53  ;;  %v225_v56 = vmul.f32 %v1080_v32, %v224_v28  ;;  %vm1123_vm3 = vcmp.lt.f32.partialorder %v244_v30, 0.0004427343  ;;  %v298_v22 = vand.u32 2147483647, %v1095_v55 }
  0x42   :  { %v313_v27 = vmul.f32 -0.5, %v1101_v3  ;;  %v243_v4 = vmul.f32 %v1083_v37, %v242_v35  ;;  %v261_v11 = vmul.f32 %v835_v42, %v260_v36  ;;  %vm1130_vm4 = vcmp.lt.f32.partialorder %v262_v39, 0.0004427343 }
  0x43   :  { %v296_v32 = vadd.f32 1.0, %v295_v45  ;;  %v316_v17 = vand.u32 2147483647, %v1101_v3  ;;  %864 = vpow2.f32 %v166_v58  ;;  %v279_v26 = vmul.f32 %v837_v49, %v278_v50 }
  0x44   :  { %v843_v52 = vpop.eup %842  ;;  %vm1137_vm5 = vcmp.lt.f32.partialorder %v280_v51, 0.0004427343  ;;  %vm1143_vm6 = vcmp.lt.f32.partialorder %v298_v22, 0.0004427343  ;;  %v314_v31 = vadd.f32 1.0, %v313_v27  ;;  %866 = vpow2.f32 %v1099_v61 }
  0x45   :  { %v845_v59 = vpop.eup %844  ;;  %v186_v60 = vmul.f32 0.6931472, %v843_v52  ;;  %v174_v39 = vmul.f32 1.442695, %v1087_v44  ;;  %v297_v33 = vmul.f32 %v1095_v55, %v296_v32  ;;  %vm1155_vm7 = vcmp.lt.f32.partialorder %v316_v17, 0.0004427343 }
  0x46   :  { %v847_v53 = vpop.eup %846  ;;  %v204_v16 = vmul.f32 0.6931472, %v845_v59  ;;  %v182_v44 = vmul.f32 1.442695, %v1092_v48  ;;  %v315_v55 = vmul.f32 %v1101_v3, %v314_v31  ;;  %vm366_vm8 = vcmp.lt.s32.totalorder %v1007_v38, 1 }
  0x47   :  { %v192_v21 = vsel %vm1105_vm0, %v189_v41, %v186_v60  ;;  %v222_v25 = vmul.f32 0.6931472, %v847_v53  ;;  %v849_v37 = vpop.eup %848  ;;  %868 = vpow2.f32 %v174_v39 }
  0x48   :  { %v210_v42 = vsel %vm1112_vm1, %v207_v43, %v204_v16  ;;  %v328_v58 = vadd.f32 %v192_v21, %v1039_v5  ;;  %v1148_v35 = vpop.eup %850  ;;  %v240_v24 = vmul.f32 0.6931472, %v849_v37  ;;  %v178_v5 = vmul.f32 1.442695, %v1090_v47 }
  0x49   :  { %v228_v49 = vsel %vm1118_vm2, %v225_v56, %v222_v25  ;;  %v330_v36 = vadd.f32 %v210_v42, %v1041_v6  ;;  %v853_v41 = vpop.eup %852  ;;  %v77_v25 = vmax.f32 %v1029_v63, 0.0  ;;  %v71_v63 = vld [vmem:[#allocation5 + $0x78] sm:$0xff] }
  0x4a   :  { %v332_v45 = vadd.f32 %v228_v49, %v1043_v7  ;;  %v1161_v50 = vpop.eup %854  ;;  %v246_v46 = vsel %vm1123_vm3, %v243_v4, %v240_v24  ;;  %v258_v51 = vmul.f32 0.6931472, %v853_v41  ;;  %v193_v7 = vadd.f32 1.0, %v1148_v35 }
  0x4b   :  { %v468_v6 = vcombine.low %v328_v58, %v330_v36  ;;  %v857_v52 = vpop.eup %856  ;;  %v334_v56 = vadd.f32 %v246_v46, %v1045_v8  ;;  %v469_v57 = vcombine.high %v328_v58, %v330_v36  ;;  %870 = vpow2.f32 %v178_v5 }
  0x4c   :  { %v859_v22 = vpop.eup %858  ;;  %v264_v47 = vsel %vm1130_vm4, %v261_v11, %v258_v51  ;;  %v276_v27 = vmul.f32 0.6931472, %v857_v52  ;;  %v211_v3 = vadd.f32 1.0, %v1161_v50  ;;  %872 = vpow2.f32 %v182_v44 }
  0x4d   :  { %v294_v59 = vmul.f32 0.6931472, %v859_v22  ;;  %v336_v60 = vadd.f32 %v264_v47, %v1051_v12  ;;  %v470_v48 = vcombine.low %v332_v45, %v334_v56  ;;  %v471_v4 = vcombine.high %v332_v45, %v334_v56  ;;  %v861_v53 = vpop.eup %860 }
  0x4e   :  { %v282_v8 = vsel %vm1137_vm5, %v279_v26, %v276_v27  ;;  %v482_v61 = vrot.slane %v468_v6, %v1032_v0  ;;  %v1177_v16 = vpop.eup %862  ;;  %v312_v15 = vmul.f32 0.6931472, %v861_v53  ;;  %v489_v21 = vrot.slane %v469_v57, %v1032_v0 }
  0x4f   :  { %v300_v11 = vsel %vm1143_vm6, %v297_v33, %v294_v59  ;;  %v338_v32 = vadd.f32 %v282_v8, %v1053_v13  ;;  %v496_v12 = vrot.slane %v470_v48, %v1032_v0  ;;  %v503_v37 = vrot.slane %v471_v4, %v1032_v0 }
  0x50   :  { %v340_v17 = vadd.f32 %v300_v11, %v1059_v18  ;;  %v318_v26 = vsel %vm1155_vm7, %v315_v55, %v312_v15  ;;  %v229_v42 = vadd.f32 1.0, %v1177_v16  ;;  %v1190_v30 = vpop.eup %864  ;;  %v79_v18 = vmax.f32 %v1034_v1, 0.0 }
  0x51   :  { %v472_v28 = vcombine.low %v336_v60, %v338_v32  ;;  %v342_v13 = vadd.f32 %v318_v26, %v1061_v19  ;;  %v473_v31 = vcombine.high %v336_v60, %v338_v32  ;;  %874 = vlog2.f32 %v193_v7  ;;  %v1206_v56 = vpop.eup %866 }
  0x52   :  { %v532_v58 = vcombine.low %v482_v61, %v496_v12  ;;  %v533_v49 = vcombine.high %v482_v61, %v496_v12  ;;  %v196_v24 = vmul.f32 -0.5, %v1148_v35  ;;  %876 = vlog2.f32 %v211_v3 }
  0x53   :  { %v474_v36 = vcombine.low %v340_v17, %v342_v13  ;;  %v510_v39 = vrot.slane %v472_v28, %v1032_v0  ;;  %v475_v41 = vcombine.high %v340_v17, %v342_v13  ;;  %v517_v33 = vrot.slane %v473_v31, %v1032_v0 }
  0x54   :  { %v534_v43 = vcombine.low %v489_v21, %v503_v37  ;;  %v535_v45 = vcombine.high %v489_v21, %v503_v37  ;;  %878 = vlog2.f32 %v229_v42  ;;  %v247_v19 = vadd.f32 1.0, %v1190_v30  ;;  %v1208_v57 = vpop.eup %868 }
  0x55   :  { %v524_v5 = vrot.slane %v474_v36, %v1032_v0  ;;  %v531_v46 = vrot.slane %v475_v41, %v1032_v0  ;;  %v81_v51 = vmax.f32 %v1036_v2, 0.0  ;;  %v83_v6 = vmax.f32 %v1047_v9, 0.0 }
  0x56   :  { %v546_v44 = vrot.slane %v532_v58, %v1032_v0  ;;  %v560_v52 = vrot.slane %v533_v49, %v1032_v0  ;;  %v199_v55 = vand.u32 2147483647, %v1148_v35  ;;  %880 = vlog2.f32 %v247_v19 }
  0x57   :  { %v536_v7 = vcombine.low %v510_v39, %v524_v5  ;;  %v537_v22 = vcombine.high %v510_v39, %v524_v5  ;;  %v538_v47 = vcombine.low %v517_v33, %v531_v46  ;;  %v539_v27 = vcombine.high %v517_v33, %v531_v46  ;;  %v63_v33 = vld [vmem:[#allocation5 + $0x38] sm:$0xff] }
  0x58   :  { %v553_v59 = vrot.slane %v534_v43, %v1032_v0  ;;  %v567_v60 = vrot.slane %v535_v45, %v1032_v0  ;;  %v197_v48 = vadd.f32 1.0, %v196_v24  ;;  %v214_v4 = vmul.f32 -0.5, %v1161_v50  ;;  %v1217_v11 = vpop.eup %870 }
  0x59   :  { %v574_v53 = vrot.slane %v536_v7, %v1032_v0  ;;  %v588_v8 = vrot.slane %v537_v22, %v1032_v0  ;;  %v581_v61 = vrot.slane %v538_v47, %v1032_v0  ;;  %v595_v3 = vrot.slane %v539_v27, %v1032_v0  ;;  %v1223_v42 = vpop.eup %872 }
  0x5a   :  { %v217_v15 = vand.u32 2147483647, %v1161_v50  ;;  %v232_v32 = vmul.f32 -0.5, %v1177_v16  ;;  %v250_v12 = vmul.f32 -0.5, %v1190_v30  ;;  %v265_v17 = vadd.f32 1.0, %v1206_v56 }
  0x5b   :  { %v596_v21 = vcombine.low %v546_v44, %v574_v53  ;;  %v600_v26 = vcombine.low %v560_v52, %v588_v8  ;;  %v597_v28 = vcombine.high %v546_v44, %v574_v53  ;;  %v601_v37 = vcombine.high %v560_v52, %v588_v8 }
  0x5c   :  { %v598_v13 = vcombine.low %v553_v59, %v581_v61  ;;  %v602_v31 = vcombine.low %v567_v60, %v595_v3  ;;  %v599_v58 = vcombine.high %v553_v59, %v581_v61  ;;  %v603_v49 = vcombine.high %v567_v60, %v595_v3 }
  0x5d   :  { %v756_v24 = vsel %vm366_vm8, %v596_v21, 0.0  ;;  %v757_v36 = vsel %vm366_vm8, %v600_v26, 0.0  ;;  %v758_v39 = vsel %vm366_vm8, %v597_v28, 0.0  ;;  %v759_v41 = vsel %vm366_vm8, %v601_v37, 0.0  ;;  %v65_v21 = vld [vmem:[#allocation5 + $0x48] sm:$0xff] }
  0x5e   :  { %v875_v43 = vpop.eup %874  ;;  %788 = vst [vmem:[#allocation7] sm:$0xff] %v756_v24  ;;  %789 = vst [vmem:[#allocation7 + $0x8] sm:$0xff] %v757_v36  ;;  %v760_v45 = vsel %vm366_vm8, %v598_v13, 0.0  ;;  %v761_v19 = vsel %vm366_vm8, %v602_v31, 0.0  ;;  %v762_v5 = vsel %vm366_vm8, %v599_v58, 0.0  ;;  %v763_v46 = vsel %vm366_vm8, %v603_v49, 0.0 }
  0x5f   :  { %790 = vst [vmem:[#allocation7 + $0x10] sm:$0xff] %v758_v39  ;;  %791 = vst [vmem:[#allocation7 + $0x18] sm:$0xff] %v759_v41  ;;  %v877_v44 = vpop.eup %876  ;;  %v85_v52 = vmax.f32 %v1049_v10, 0.0  ;;  %v215_v7 = vadd.f32 1.0, %v214_v4  ;;  %882 = vlog2.f32 %v265_v17  ;;  %v283_v22 = vadd.f32 1.0, %v1208_v57 }
  0x60   :  { %792 = vst [vmem:[#allocation7 + $0x20] sm:$0xff] %v760_v45  ;;  %793 = vst [vmem:[#allocation7 + $0x28] sm:$0xff] %v761_v19  ;;  %v95_v47 = vmul.f32 %v63_v33, %v1034_v1  ;;  %v233_v27 = vadd.f32 1.0, %v232_v32  ;;  %v251_v59 = vadd.f32 1.0, %v250_v12  ;;  %v301_v60 = vadd.f32 1.0, %v1217_v11 }
  0x61   :  { %794 = vst [vmem:[#allocation7 + $0x30] sm:$0xff] %v762_v5  ;;  %795 = vst [vmem:[#allocation7 + $0x38] sm:$0xff] %v763_v46  ;;  %v879_v53 = vpop.eup %878  ;;  %vm1245_vm9 = vcmp.lt.f32.partialorder %v199_v55, 0.0004427343  ;;  %v235_v61 = vand.u32 2147483647, %v1177_v16  ;;  %884 = vlog2.f32 %v283_v22  ;;  %v198_v4 = vmul.f32 %v1148_v35, %v197_v48 }
  0x62   :  { %v253_v3 = vand.u32 2147483647, %v1190_v30  ;;  %vm1252_vm10 = vcmp.lt.f32.partialorder %v217_v15, 0.0004427343  ;;  %v268_v32 = vmul.f32 -0.5, %v1206_v56  ;;  %886 = vlog2.f32 %v301_v60 }
  0x63   :  { %v881_v12 = vpop.eup %880  ;;  %v195_v55 = vmul.f32 0.6931472, %v875_v43  ;;  %v213_v26 = vmul.f32 0.6931472, %v877_v44  ;;  %v216_v28 = vmul.f32 %v1161_v50, %v215_v7  ;;  %v319_v37 = vadd.f32 1.0, %v1223_v42  ;;  %v67_v50 = vld [vmem:[#allocation5 + $0x58] sm:$0xff] }
  0x64   :  { %v231_v13 = vmul.f32 0.6931472, %v879_v53  ;;  %v234_v31 = vmul.f32 %v1177_v16, %v233_v27  ;;  %v249_v58 = vmul.f32 0.6931472, %v881_v12  ;;  %v252_v35 = vmul.f32 %v1190_v30, %v251_v59 }
  0x65   :  { %vm1261_vm11 = vcmp.lt.f32.partialorder %v235_v61, 0.0004427343  ;;  %vm1265_vm12 = vcmp.lt.f32.partialorder %v253_v3, 0.0004427343  ;;  %v286_v49 = vmul.f32 -0.5, %v1208_v57  ;;  %888 = vlog2.f32 %v319_v37 }
  0x66   :  { %v97_v24 = vmul.f32 %v65_v21, %v1036_v2  ;;  %v105_v16 = vsub.f32 %v73_v34, %v1064_v20  ;;  %v269_v36 = vadd.f32 1.0, %v268_v32  ;;  %v304_v30 = vmul.f32 -0.5, %v1217_v11  ;;  %v69_v34 = vld [vmem:[#allocation5 + $0x68] sm:$0xff] }
  0x67   :  { %v107_v39 = vsub.f32 %v75_v40, %v1070_v23  ;;  %v109_v41 = vsub.f32 %v77_v25, %v1076_v29  ;;  %v111_v33 = vsub.f32 %v79_v18, %v95_v47  ;;  %v201_v43 = vsel %vm1245_vm9, %v198_v4, %v195_v55 }
  0x68   :  { %v219_v54 = vsel %vm1252_vm10, %v216_v28, %v213_v26  ;;  %v237_v20 = vsel %vm1261_vm11, %v234_v31, %v231_v13  ;;  %v255_v62 = vsel %vm1265_vm12, %v252_v35, %v249_v58  ;;  %v271_v23 = vand.u32 2147483647, %v1206_v56 }
  0x69   :  { %v87_v29 = vmax.f32 %v1055_v14, 0.0  ;;  %v99_v1 = vmul.f32 %v67_v50, %v1047_v9  ;;  %v287_v40 = vadd.f32 1.0, %v286_v49  ;;  %v322_v25 = vmul.f32 -0.5, %v1223_v42 }
  0x6a   :  { %v270_v18 = vmul.f32 %v1206_v56, %v269_v36  ;;  %v289_v45 = vand.u32 2147483647, %v1208_v57  ;;  %v305_v19 = vadd.f32 1.0, %v304_v30  ;;  %v307_v5 = vand.u32 2147483647, %v1217_v11 }
  0x6b   :  { %v329_v46 = vadd.f32 %v201_v43, %v105_v16  ;;  %v331_v44 = vadd.f32 %v219_v54, %v107_v39  ;;  %v333_v7 = vadd.f32 %v237_v20, %v109_v41  ;;  %v335_v22 = vadd.f32 %v255_v62, %v111_v33 }
  0x6c   :  { %v883_v47 = vpop.eup %882  ;;  %v101_v27 = vmul.f32 %v69_v34, %v1049_v10  ;;  %v103_v59 = vmul.f32 %v71_v63, %v1055_v14  ;;  %v113_v60 = vsub.f32 %v81_v51, %v97_v24  ;;  %vm1302_vm13 = vcmp.lt.f32.partialorder %v271_v23, 0.0004427343 }
  0x6d   :  { %v115_v56 = vsub.f32 %v83_v6, %v99_v1  ;;  %v267_v8 = vmul.f32 0.6931472, %v883_v47  ;;  %v288_v61 = vmul.f32 %v1208_v57, %v287_v40  ;;  %v323_v3 = vadd.f32 1.0, %v322_v25 }
  0x6e   :  { %v885_v4 = vpop.eup %884  ;;  %vm1309_vm14 = vcmp.lt.f32.partialorder %v289_v45, 0.0004427343  ;;  %v306_v14 = vmul.f32 %v1217_v11, %v305_v19  ;;  %vm1314_vm15 = vcmp.lt.f32.partialorder %v307_v5, 0.0004427343  ;;  %v325_v51 = vand.u32 2147483647, %v1223_v42 }
  0x6f   :  { %v887_v32 = vpop.eup %886  ;;  %v273_v9 = vsel %vm1302_vm13, %v270_v18, %v267_v8  ;;  %v285_v6 = vmul.f32 0.6931472, %v885_v4  ;;  %v604_v57 = vcombine.low %v329_v46, %v331_v44  ;;  %v606_v12 = vcombine.low %v333_v7, %v335_v22 }
  0x70   :  { %v117_v21 = vsub.f32 %v85_v52, %v101_v27  ;;  %v303_v55 = vmul.f32 0.6931472, %v887_v32  ;;  %v337_v26 = vadd.f32 %v273_v9, %v113_v60  ;;  %v324_v28 = vmul.f32 %v1223_v42, %v323_v3 }
  0x71   :  { %v291_v11 = vsel %vm1309_vm14, %v288_v61, %v285_v6  ;;  %v605_v37 = vcombine.high %v329_v46, %v331_v44  ;;  %v607_v13 = vcombine.high %v333_v7, %v335_v22  ;;  %v119_v58 = vsub.f32 %v87_v29, %v103_v59 }
  0x72   :  { %v889_v31 = vpop.eup %888  ;;  %v309_v35 = vsel %vm1314_vm15, %v306_v14, %v303_v55  ;;  %vm326_vm0 = vcmp.lt.f32.partialorder %v325_v51, 0.0004427343  ;;  %v339_v48 = vadd.f32 %v291_v11, %v115_v56  ;;  %v618_v10 = vrot.slane %v604_v57, %v1032_v0 }
  0x73   :  { %v321_v15 = vmul.f32 0.6931472, %v889_v31  ;;  %v632_v52 = vrot.slane %v606_v12, %v1032_v0  ;;  %v341_v49 = vadd.f32 %v309_v35, %v117_v21  ;;  %v625_v42 = vrot.slane %v605_v37, %v1032_v0 }
  0x74   :  { %v608_v50 = vcombine.low %v337_v26, %v339_v48  ;;  %v609_v24 = vcombine.high %v337_v26, %v339_v48  ;;  %v639_v36 = vrot.slane %v607_v13, %v1032_v0 }
  0x75   :  { %v327_v16 = vsel %vm326_vm0, %v324_v28, %v321_v15  ;;  %v668_v39 = vcombine.low %v618_v10, %v632_v52  ;;  %v669_v41 = vcombine.high %v618_v10, %v632_v52 }
  0x76   :  { %v343_v30 = vadd.f32 %v327_v16, %v119_v58  ;;  %v646_v43 = vrot.slane %v608_v50, %v1032_v0  ;;  %v653_v20 = vrot.slane %v609_v24, %v1032_v0  ;;  %v670_v62 = vcombine.low %v625_v42, %v639_v36 }
  0x77   :  { %v671_v23 = vcombine.high %v625_v42, %v639_v36  ;;  %v682_v29 = vrot.slane %v668_v39, %v1032_v0  ;;  %v696_v1 = vrot.slane %v669_v41, %v1032_v0 }
  0x78   :  { %v610_v33 = vcombine.low %v341_v49, %v343_v30  ;;  %v611_v54 = vcombine.high %v341_v49, %v343_v30  ;;  %v689_v19 = vrot.slane %v670_v62, %v1032_v0 }
  0x79   :  { %v703_v5 = vrot.slane %v671_v23, %v1032_v0 }
  0x7a   :  { %v660_v34 = vrot.slane %v610_v33, %v1032_v0  ;;  %v667_v63 = vrot.slane %v611_v54, %v1032_v0 }
  0x7c   :  { %v672_v40 = vcombine.low %v646_v43, %v660_v34  ;;  %v673_v25 = vcombine.high %v646_v43, %v660_v34  ;;  %v674_v18 = vcombine.low %v653_v20, %v667_v63  ;;  %v675_v45 = vcombine.high %v653_v20, %v667_v63 }
  0x7e   :  { %v710_v46 = vrot.slane %v672_v40, %v1032_v0  ;;  %v724_v44 = vrot.slane %v673_v25, %v1032_v0  ;;  %v717_v7 = vrot.slane %v674_v18, %v1032_v0  ;;  %v731_v22 = vrot.slane %v675_v45, %v1032_v0 }
  0x80   :  { %v732_v47 = vcombine.low %v682_v29, %v710_v46  ;;  %v736_v27 = vcombine.low %v696_v1, %v724_v44  ;;  %v733_v59 = vcombine.high %v682_v29, %v710_v46  ;;  %v737_v60 = vcombine.high %v696_v1, %v724_v44 }
  0x81   :  { %v734_v53 = vcombine.low %v689_v19, %v717_v7  ;;  %v738_v56 = vcombine.low %v703_v5, %v731_v22  ;;  %v735_v8 = vcombine.high %v689_v19, %v717_v7  ;;  %v739_v61 = vcombine.high %v703_v5, %v731_v22 }
  0x82   :  { %v764_v3 = vsel %vm366_vm8, %v732_v47, 0.0  ;;  %v765_v4 = vsel %vm366_vm8, %v736_v27, 0.0  ;;  %v766_v17 = vsel %vm366_vm8, %v733_v59, 0.0  ;;  %v767_v0 = vsel %vm366_vm8, %v737_v60, 0.0 }
  0x83   :  { %796 = vst [vmem:[#allocation7 + $0x40] sm:$0xff] %v764_v3  ;;  %797 = vst [vmem:[#allocation7 + $0x48] sm:$0xff] %v765_v4  ;;  %v768_v14 = vsel %vm366_vm8, %v734_v53, 0.0  ;;  %v769_v2 = vsel %vm366_vm8, %v738_v56, 0.0  ;;  %v770_v51 = vsel %vm366_vm8, %v735_v8, 0.0  ;;  %v771_v32 = vsel %vm366_vm8, %v739_v61, 0.0 }
  0x84   :  { %798 = vst [vmem:[#allocation7 + $0x50] sm:$0xff] %v766_v17  ;;  %799 = vst [vmem:[#allocation7 + $0x58] sm:$0xff] %v767_v0 }
  0x85   :  { %800 = vst [vmem:[#allocation7 + $0x60] sm:$0xff] %v768_v14  ;;  %801 = vst [vmem:[#allocation7 + $0x68] sm:$0xff] %v769_v2 }
  0x86   :  { %802 = vst [vmem:[#allocation7 + $0x70] sm:$0xff] %v770_v51  ;;  %803 = vst [vmem:[#allocation7 + $0x78] sm:$0xff] %v771_v32 }
  0x87   :  { %941 = shalt.err (!%p938_p0)
}
  0x88   :  { %813 = dma.vmem_to_hbm [thread:$0]  %s811_s1, 2048, %s1365_s2, [#allocation4]  }
  0x89   :  { %954 = dma.done.wait [#allocation4], 2048  }
  0x8a   :  { %955 = vsyncadd [#allocation4], 4294965248 }
  0x8b   :  { %817 = vsyncpa [#allocation3], 1 }
  0x8c   :  { %818 = vsyncpa [#allocation6], 1 }
  0x8d   :  { %819 = vsyncpa [#allocation4], 1 }

</bundles_post_ra>
